<compile_context>
chip_gen: v7x
topology: tpu7x:2x2x1
jax: 0.10.0
libtpu: 0.0.40
codegen_flags: <defaults>
</compile_context>

<pallas_src>
import jax
import jax.numpy as jnp
from jax.experimental import pallas as pl
from jax.experimental.pallas import tpu as pltpu


def _round_down_to(x, m):
    return (x // m) * m


def _round_up_to(x, m):
    return ((x + m - 1) // m) * m


def conv1x1_kernel(x_ref, w_ref, b_ref, o_ref):
    """One (batch-block, spatial-tile) step of the 1x1 conv.

    x_ref: (Nb, Cin, TS)   activations, channels on sublanes, pixels on lanes
    w_ref: (Cout, Cin)     conv weight (tiny, resident in VMEM)
    b_ref: (Cout, 1)       conv bias (broadcast over pixels)
    o_ref: (Nb, Cout, TS)  output tile (lane-dense: TS is a multiple of 128)
    """
    y = jnp.einsum("oc,bcs->bos", w_ref[...], x_ref[...],
                   preferred_element_type=jnp.float32)
    o_ref[...] = (y + b_ref[...][None, :, :]).astype(o_ref.dtype)


def _choose_block(N, Cin, Cout, hw128, budget_bytes):
    """Pick (Nb, ts) so the double-buffered in+out activation footprint
    2*Nb*(Cin+Cout)*ts*4 stays within `budget_bytes` while tiles are as large
    as possible (this kernel is mem-bound; bigger tiles = more HBM roofline)."""
    bytes_per_col = 2 * (Cin + Cout) * 4          # double-buffered f32 in+out / pixel
    ts = min(hw128, max(128, _round_down_to(budget_bytes // bytes_per_col, 128)))
    nb = 1
    if ts == hw128:
        if N > 1:
            # Whole spatial extent fits in one tile: pack batches per grid step
            # to amortize per-step overhead, but keep >= 2 grid steps so both
            # v7x TensorCores get sharded work.
            max_nb = max(1, budget_bytes // (bytes_per_col * hw128))
            max_nb = min(max_nb, max(1, N // 2))
            nb = next(d for d in range(max_nb, 0, -1) if N % d == 0)
        elif hw128 >= 256:
            # Single batch, single tile: split spatially so the grid has >= 2
            # parallel steps.
            ts = max(128, _round_down_to(hw128 // 2, 128))
    return nb, ts


def conv1x1(x, w, b, *, vmem_budget_bytes=24 * 1024 * 1024):
    """x: (N, Cin, HW) f32;  w: (Cout, Cin);  b: (Cout, 1)  ->  (N, Cout, HW)."""
    N, Cin, HW = x.shape
    Cout = w.shape[0]

    # Lane-dense spatial axis: pad HW up to a multiple of 128 and of the tile,
    # rather than ever emitting a masked-store / VMEM-busting single tile.
    hw128 = _round_up_to(HW, 128)
    nb, ts = _choose_block(N, Cin, Cout, hw128, vmem_budget_bytes)
    hw_pad = _round_up_to(hw128, ts)
    if hw_pad != HW:
        x = jnp.pad(x, ((0, 0), (0, 0), (0, hw_pad - HW)))

    grid = (N // nb, hw_pad // ts)

    # Raise the scoped-VMEM limit to cover the double-buffered tiles + weights
    # (with headroom), but stay well under v7x's 64 MiB/TC physical VMEM.
    act_bytes = 2 * nb * (Cin + Cout) * ts * 4
    wgt_bytes = (Cout * Cin + Cout) * 4
    vmem_limit = max(int(act_bytes * 1.5) + wgt_bytes, 16 * 1024 * 1024)
    vmem_limit = min(vmem_limit, 48 * 1024 * 1024)

    cost = pl.CostEstimate(
        flops=2 * N * Cout * Cin * HW,
        transcendentals=0,
        bytes_accessed=4 * (N * Cin * HW + N * Cout * HW + Cout * Cin + Cout),
    )

    y = pl.pallas_call(
        conv1x1_kernel,
        out_shape=jax.ShapeDtypeStruct((N, Cout, hw_pad), x.dtype),
        grid=grid,
        in_specs=[
            pl.BlockSpec((nb, Cin, ts), lambda n, s: (n, 0, s)),   # activations
            pl.BlockSpec((Cout, Cin), lambda n, s: (0, 0)),        # weight (resident)
            pl.BlockSpec((Cout, 1), lambda n, s: (0, 0)),          # bias   (resident)
        ],
        out_specs=pl.BlockSpec((nb, Cout, ts), lambda n, s: (n, 0, s)),
        compiler_params=pltpu.CompilerParams(
            dimension_semantics=("parallel", "parallel"),
            vmem_limit_bytes=vmem_limit,
        ),
        cost_estimate=cost,
    )(x, w, b)

    if hw_pad != HW:
        y = y[:, :, :HW]
    return y


def init_outconv_params(key, in_ch, out_ch):
    """Deterministic synthetic parameters matching nn.Conv2d(in_ch, out_ch, 1).

    PyTorch weight is (out_ch, in_ch, 1, 1); we store the squeezed (out_ch, in_ch)
    and bias as (out_ch, 1) so the jitted hot path needs no reshapes/casts.
    """
    k1, k2 = jax.random.split(key)
    bound = 1.0 / jnp.sqrt(jnp.float32(in_ch))
    w = jax.random.uniform(k1, (out_ch, in_ch), jnp.float32, -bound, bound)
    b = jax.random.uniform(k2, (out_ch, 1), jnp.float32, -bound, bound)
    return {"w": w, "b": b}


@jax.jit
def outconv_forward(x_nchw, params):
    """outconv.forward: NCHW in, NCHW out (matches the PyTorch module)."""
    N, Cin, H, W = x_nchw.shape
    Cout = params["w"].shape[0]
    x = x_nchw.reshape(N, Cin, H * W)                # contiguous view, free
    y = conv1x1(x, params["w"], params["b"])
    return y.reshape(N, Cout, H, W)


if __name__ == "__main__":
    key = jax.random.PRNGKey(0)
    k_x, k_p = jax.random.split(key)

    N, in_ch, out_ch, H, W = 2, 4, 8, 16, 16
    x = jax.random.normal(k_x, (N, in_ch, H, W), jnp.float32)     # NCHW like PyTorch
    params = init_outconv_params(k_p, in_ch, out_ch)

    out = jax.block_until_ready(outconv_forward(x, params))

    # Pure-JAX reference (1x1 conv == channel einsum + bias).
    ref = jnp.einsum("oc,nchw->nohw", params["w"], x) \
        + params["b"].reshape(1, out_ch, 1, 1)

    assert out.shape == (N, out_ch, H, W), out.shape
    assert bool(jnp.all(jnp.isfinite(out)))
    assert bool(jnp.allclose(out, ref, atol=1e-5, rtol=1e-5))
    print("KERNEL_OK")
</pallas_src>

<mosaic_0001>
module attributes {stable_mosaic.version = 11 : i64} {
  func.func @conv1x1_kernel(%arg0: i32, %arg1: i32, %arg2: memref<1x4x256xf32, #tpu.memory_space<vmem>>, %arg3: memref<8x4xf32, #tpu.memory_space<vmem>>, %arg4: memref<8x1xf32, #tpu.memory_space<vmem>>, %arg5: memref<1x8x256xf32, #tpu.memory_space<vmem>>) attributes {dimension_semantics = [#tpu.dimension_semantics<parallel>, #tpu.dimension_semantics<parallel>], iteration_bounds = array<i64: 2, 1>, scalar_prefetch = 0 : i64, scratch_operands = 0 : i64, tpu.core_type = #tpu.core_type<tc>, window_params = [{transform_indices = @transform_0, window_bounds = array<i64: 1, 4, 256>}, {pipeline_mode = #tpu.pipeline_mode<synchronous>, transform_indices = @transform_1, window_bounds = array<i64: 8, 4>}, {pipeline_mode = #tpu.pipeline_mode<synchronous>, transform_indices = @transform_2, window_bounds = array<i64: 8, 1>}, {transform_indices = @transform_3, window_bounds = array<i64: 1, 8, 256>}]} {
    %c0 = arith.constant 0 : index
    %c0_0 = arith.constant 0 : index
    %0 = vector.load %arg3[%c0, %c0_0] : memref<8x4xf32, #tpu.memory_space<vmem>>, vector<8x4xf32>
    %c0_1 = arith.constant 0 : index
    %c0_2 = arith.constant 0 : index
    %c0_3 = arith.constant 0 : index
    %1 = vector.load %arg2[%c0_1, %c0_2, %c0_3] : memref<1x4x256xf32, #tpu.memory_space<vmem>>, vector<1x4x256xf32>
    "tpu.trace_start"() <{level = 10 : i32, message = "oc,bcs->bos"}> : () -> ()
    %cst = arith.constant dense<0.000000e+00> : vector<1x256x8xf32>
    %2 = tpu.matmul %1, %0, %cst {dimension_numbers = #tpu.dot_dimension_numbers<[1], [1], [0, 2], [0], [0, 0, 0, 2, 1, 0], [], []>} : vector<1x4x256xf32>, vector<8x4xf32>, vector<1x256x8xf32> -> vector<1x256x8xf32>
    %3 = tpu.transpose %2, [0, 2, 1] : vector<1x256x8xf32> -> vector<1x8x256xf32>
    "tpu.trace_stop"() : () -> ()
    %c0_4 = arith.constant 0 : index
    %c0_5 = arith.constant 0 : index
    %4 = vector.load %arg4[%c0_4, %c0_5] : memref<8x1xf32, #tpu.memory_space<vmem>>, vector<8x1xf32>
    %5 = vector.shape_cast %4 : vector<8x1xf32> to vector<1x8x1xf32>
    %6 = vector.broadcast %5 : vector<1x8x1xf32> to vector<1x8x256xf32>
    %7 = arith.addf %3, %6 : vector<1x8x256xf32>
    %c0_6 = arith.constant 0 : index
    %c0_7 = arith.constant 0 : index
    %c0_8 = arith.constant 0 : index
    %8 = vector.load %arg5[%c0_6, %c0_7, %c0_8] : memref<1x8x256xf32, #tpu.memory_space<vmem>>, vector<1x8x256xf32>
    tpu.vector_store %arg5[%c0_6, %c0_7, %c0_8], %7 {strides = array<i32>} : memref<1x8x256xf32, #tpu.memory_space<vmem>>, vector<1x8x256xf32>,
    return
  }
  func.func @transform_0(%arg0: i32, %arg1: i32) -> (i32, i32, i32) {
    %c0_i32 = arith.constant 0 : i32
    %c0_i32_0 = arith.constant 0 : i32
    return %arg0, %c0_i32, %arg1 : i32, i32, i32
  }
  func.func @transform_1(%arg0: i32, %arg1: i32) -> (i32, i32) {
    %c0_i32 = arith.constant 0 : i32
    %c0_i32_0 = arith.constant 0 : i32
    %c0_i32_1 = arith.constant 0 : i32
    return %c0_i32, %c0_i32_0 : i32, i32
  }
  func.func @transform_2(%arg0: i32, %arg1: i32) -> (i32, i32) {
    %c0_i32 = arith.constant 0 : i32
    %c0_i32_0 = arith.constant 0 : i32
    %c0_i32_1 = arith.constant 0 : i32
    return %c0_i32, %c0_i32_0 : i32, i32
  }
  func.func @transform_3(%arg0: i32, %arg1: i32) -> (i32, i32, i32) {
    %c0_i32 = arith.constant 0 : i32
    %c0_i32_0 = arith.constant 0 : i32
    return %arg0, %c0_i32, %arg1 : i32, i32, i32
  }
}

</mosaic_0001>

<bundles_post_ra>
// kernel: outconv_forward.1
= control target key start
LH: loop header
LB: loop body
LE: loop exit
PB: predicated region body
PF: predicated region fallthrough
CT: control target
= control target key end

     0   :  { %s970_s12 = smov 0   ;;  %s972_s13 = smov 0   ;;  %s1049_s0 = inlined_call_operand.vmem [shape: f32[2,4,256], index: 0, kind: input, shape index: {}]   ;;  %s1050_s1 = inlined_call_operand.vmem [shape: f32[8,4], index: 1, kind: input, shape index: {}]   ;;  %s1051_s2 = inlined_call_operand.vmem [shape: f32[8,1], index: 2, kind: input, shape index: {}]   ;;  %s1052_s3 = inlined_call_operand.vmem [shape: f32[2,8,256], index: 3, kind: output, shape index: {}]  }
   0x1   :  { %s974_s14 = smov 0  }
   0x2 LB: > { %s25_s15 = sadd.s32 1, %s943_s13  ;;  %p769_p0 = scmp.ge.s32.totalorder %s947_s14, 1  ;;  %s947_s14 = sphi %s974_s14, %s13_s14   ;;  %s943_s13 = sphi %s972_s13, %s1054_s13   ;;  %s939_s12 = sphi %s970_s12, %s1053_s12  }
   0x3   : > { %p27_p1 = scmp.ge.s32.totalorder %s25_s15, 2  ;;  %p158_p2 = scmp.lt.s32.totalorder %s947_s14, 3 }
   0x5   : > { %s1056_s15 = smov (%p27_p1, %s25_s15), 0  ;;  %p159_p3 = pnand %p769_p0, %p158_p2 }
   0x6   : > { %p191_p4 = scmp.lt.s32.totalorder (!%p159_p3), %s939_s12, 1  ;;  %v210_v1 = vld [vmem:[%s1050_s1] sm:$0xff] (!%p159_p3)  ;;  %vm279_vm0 = vcmask (!%p159_p3), 31744   ;;  %v949_v60 = vmov (!%p159_p3), 0  }
   0x7   : > { %162 = sbr.rel (%p159_p3) target bundleno = 586 (0x24a), region = 32  ;;  %844 = vmatprep.subr.msk.mxu0 (!%p159_p3), %vm279_vm0, %v210_v1  ;;  %894 = vmatprep.subr.msk.mxu1 (!%p159_p3), %vm279_vm0, %v210_v1  ;;  %v668_v59 = vld [vmem:[%s1051_s2] sm:$0xff] (!%p159_p3) }
   0x8   : > { %845 = vmatpush3.xpose.msk.msra.mxu0 (!%p159_p3), %vm279_vm0, %v210_v1  ;;  %895 = vmatpush3.xpose.msk.msra.mxu1 (!%p159_p3), %vm279_vm0, %v210_v1 }
   0xe   : > { %s1058_s12 = smov (!%p191_p4, %s939_s12), 1 }
   0xf   : > { %s809_s16 = sshll.u32 %s1058_s12, 3  ;;  %s810_s24 = sshll.u32 %s1058_s12, 4 }
  0x10   : > { %s198_s19 = scalar_lea.vmem %s1049_s0, %s809_s16  ;;  %s208_s27 = scalar_lea.vmem %s1052_s3, %s810_s24 }
  0x11   : > { %v211_v0 = vld [vmem:[%s198_s19] sm:$0xff] }
  0x12   : > { %215 = vxpose.xlu0.b32.start.end [1/1] (short) %v211_v0, 128  ;;  %v213_v2 = vcombine.high %v211_v0, %v211_v0 }
  0x4f   : > { %247 = vxpose.xlu0.b32.start.end [1/1] (short) %v213_v2, 128 }
  0x92   : > { %v231_v3 = vpop.trf.xlu0 }
  0x93   : > { %846 = vmatprep.mubr.msk.f32.mxu0 %vm279_vm0, %v231_v3 }
  0x96   : > { %v232_v4 = vpop.trf.xlu0 }
  0x97   : > { %847 = vmatmul.mubr.msk.f32.vlgmr.msra.gmra.mrb[0].mxu0 %vm279_vm0, %v232_v4 }
  0x9a   : > { %v233_v5 = vpop.trf.xlu0 }
  0x9b   : > { %849 = vmatprep.mubr.msk.f32.mxu0 %vm279_vm0, %v233_v5 }
  0x9e   : > { %v234_v6 = vpop.trf.xlu0 }
  0x9f   : > { %850 = vmatmul.mubr.msk.f32.gmra.mrb[2].mxu0 %vm279_vm0, %v234_v6 }
  0xa2   : > { %v235_v7 = vpop.trf.xlu0 }
  0xa3   : > { %852 = vmatprep.mubr.msk.f32.mxu0 %vm279_vm0, %v235_v7 }
  0xa6   : > { %v236_v8 = vpop.trf.xlu0 }
  0xa7   : > { %853 = vmatmul.mubr.msk.f32.gmra.mrb[4].mxu0 %vm279_vm0, %v236_v8 }
  0xaa   : > { %v237_v9 = vpop.trf.xlu0 }
  0xab   : > { %855 = vmatprep.mubr.msk.f32.mxu0 %vm279_vm0, %v237_v9 }
  0xae   : > { %v238_v10 = vpop.trf.xlu0 }
  0xaf   : > { %856 = vmatmul.mubr.msk.f32.gmra.mrb[6].mxu0 %vm279_vm0, %v238_v10 }
  0xb2   : > { %v239_v11 = vpop.trf.xlu0 }
  0xb3   : > { %858 = vmatprep.mubr.msk.f32.mxu0 %vm279_vm0, %v239_v11 }
  0xb6   : > { %v240_v12 = vpop.trf.xlu0 }
  0xb7   : > { %859 = vmatmul.mubr.msk.f32.gmra.mrb[8].mxu0 %vm279_vm0, %v240_v12 }
  0xba   : > { %v241_v13 = vpop.trf.xlu0 }
  0xbb   : > { %861 = vmatprep.mubr.msk.f32.mxu0 %vm279_vm0, %v241_v13 }
  0xbe   : > { %v242_v14 = vpop.trf.xlu0 }
  0xbf   : > { %862 = vmatmul.mubr.msk.f32.gmra.mrb[10].mxu0 %vm279_vm0, %v242_v14 }
  0xc2   : > { %v243_v15 = vpop.trf.xlu0 }
  0xc3   : > { %864 = vmatprep.mubr.msk.f32.mxu0 %vm279_vm0, %v243_v15 }
  0xc6   : > { %v244_v16 = vpop.trf.xlu0 }
  0xc7   : > { %865 = vmatmul.mubr.msk.f32.gmra.mrb[12].mxu0 %vm279_vm0, %v244_v16 }
  0xca   : > { %v245_v17 = vpop.trf.xlu0 }
  0xcb   : > { %867 = vmatprep.mubr.msk.f32.mxu0 %vm279_vm0, %v245_v17 }
  0xce   : > { %v246_v18 = vpop.trf.xlu0 }
  0xcf   : > { %868 = vmatmul.mubr.msk.f32.gmra.mrb[14].mxu0 %vm279_vm0, %v246_v18 }
  0xd2   : > { %v263_v19 = vpop.trf.xlu0 }
  0xd3   : > { %870 = vmatprep.mubr.msk.f32.mxu1 %vm279_vm0, %v263_v19 }
  0xd6   : > { %v264_v20 = vpop.trf.xlu0 }
  0xd7   : > { %871 = vmatmul.mubr.msk.f32.vlgmr.msra.gmra.mrb[0].mxu1 %vm279_vm0, %v264_v20 }
  0xda   : > { %v265_v21 = vpop.trf.xlu0 }
  0xdb   : > { %873 = vmatprep.mubr.msk.f32.mxu1 %vm279_vm0, %v265_v21 }
  0xde   : > { %v266_v22 = vpop.trf.xlu0 }
  0xdf   : > { %874 = vmatmul.mubr.msk.f32.gmra.mrb[2].mxu1 %vm279_vm0, %v266_v22 }
  0xe2   : > { %v267_v23 = vpop.trf.xlu0 }
  0xe3   : > { %876 = vmatprep.mubr.msk.f32.mxu1 %vm279_vm0, %v267_v23 }
  0xe6   : > { %v268_v24 = vpop.trf.xlu0 }
  0xe7   : > { %877 = vmatmul.mubr.msk.f32.gmra.mrb[4].mxu1 %vm279_vm0, %v268_v24 }
  0xea   : > { %v269_v25 = vpop.trf.xlu0 }
  0xeb   : > { %879 = vmatprep.mubr.msk.f32.mxu1 %vm279_vm0, %v269_v25 }
  0xee   : > { %v270_v26 = vpop.trf.xlu0 }
  0xef   : > { %880 = vmatmul.mubr.msk.f32.gmra.mrb[6].mxu1 %vm279_vm0, %v270_v26 }
  0xf2   : > { %v271_v27 = vpop.trf.xlu0 }
  0xf3   : > { %882 = vmatprep.mubr.msk.f32.mxu1 %vm279_vm0, %v271_v27 }
  0xf6   : > { %v272_v28 = vpop.trf.xlu0 }
  0xf7   : > { %883 = vmatmul.mubr.msk.f32.gmra.mrb[8].mxu1 %vm279_vm0, %v272_v28 }
  0xfa   : > { %v273_v29 = vpop.trf.xlu0 }
  0xfb   : > { %885 = vmatprep.mubr.msk.f32.mxu1 %vm279_vm0, %v273_v29 }
  0xfe   : > { %v274_v30 = vpop.trf.xlu0 }
  0xff   : > { %886 = vmatmul.mubr.msk.f32.gmra.mrb[10].mxu1 %vm279_vm0, %v274_v30 }
 0x102   : > { %v275_v31 = vpop.trf.xlu0 }
 0x103   : > { %888 = vmatprep.mubr.msk.f32.mxu1 %vm279_vm0, %v275_v31 }
 0x106   : > { %v276_v32 = vpop.trf.xlu0 }
 0x107   : > { %889 = vmatmul.mubr.msk.f32.gmra.mrb[12].mxu1 %vm279_vm0, %v276_v32 }
 0x10a   : > { %v277_v33 = vpop.trf.xlu0 }
 0x10b   : > { %891 = vmatprep.mubr.msk.f32.mxu1 %vm279_vm0, %v277_v33 }
 0x10e   : > { %v278_v34 = vpop.trf.xlu0 }
 0x10f   : > { %892 = vmatmul.mubr.msk.f32.gmra.mrb[14].mxu1 %vm279_vm0, %v278_v34 }
 0x16a   : > { %v848_v35 = vpop.f32.mrb[0].mxu0 }
 0x16b   : > { %v445_v36 = vpop.f32.mrb[1].mxu0 }
 0x16c   : > { %604 = vxpose.xlu1.b32.start [1/16] (narrow) %v445_v36, 8 }
 0x170   : > { %605 = vxpose.xlu1.b32.cont [2/16] (narrow) %v848_v35, 8 }
 0x172   : > { %v851_v37 = vpop.f32.mrb[2].mxu0 }
 0x173   : > { %v455_v38 = vpop.f32.mrb[3].mxu0 }
 0x174   : > { %606 = vxpose.xlu1.b32.cont [3/16] (narrow) %v455_v38, 8 }
 0x178   : > { %607 = vxpose.xlu1.b32.cont [4/16] (narrow) %v851_v37, 8 }
 0x17a   : > { %v854_v39 = vpop.f32.mrb[4].mxu0 }
 0x17b   : > { %v465_v40 = vpop.f32.mrb[5].mxu0 }
 0x17c   : > { %608 = vxpose.xlu1.b32.cont [5/16] (narrow) %v465_v40, 8 }
 0x180   : > { %609 = vxpose.xlu1.b32.cont [6/16] (narrow) %v854_v39, 8 }
 0x182   : > { %v857_v41 = vpop.f32.mrb[6].mxu0 }
 0x183   : > { %v475_v42 = vpop.f32.mrb[7].mxu0 }
 0x184   : > { %610 = vxpose.xlu1.b32.cont [7/16] (narrow) %v475_v42, 8 }
 0x188   : > { %611 = vxpose.xlu1.b32.cont [8/16] (narrow) %v857_v41, 8 }
 0x18a   : > { %v860_v43 = vpop.f32.mrb[8].mxu0 }
 0x18b   : > { %v485_v44 = vpop.f32.mrb[9].mxu0 }
 0x18c   : > { %612 = vxpose.xlu1.b32.cont [9/16] (narrow) %v485_v44, 8 }
 0x190   : > { %613 = vxpose.xlu1.b32.cont [10/16] (narrow) %v860_v43, 8 }
 0x192   : > { %v863_v45 = vpop.f32.mrb[10].mxu0 }
 0x193   : > { %v495_v46 = vpop.f32.mrb[11].mxu0 }
 0x194   : > { %614 = vxpose.xlu1.b32.cont [11/16] (narrow) %v495_v46, 8 }
 0x198   : > { %615 = vxpose.xlu1.b32.cont [12/16] (narrow) %v863_v45, 8 }
 0x19a   : > { %v866_v47 = vpop.f32.mrb[12].mxu0 }
 0x19b   : > { %v505_v48 = vpop.f32.mrb[13].mxu0 }
 0x19c   : > { %616 = vxpose.xlu1.b32.cont [13/16] (narrow) %v505_v48, 8 }
 0x1a0   : > { %617 = vxpose.xlu1.b32.cont [14/16] (narrow) %v866_v47, 8 }
 0x1a2   : > { %v869_v49 = vpop.f32.mrb[14].mxu0 }
 0x1a3   : > { %v515_v50 = vpop.f32.mrb[15].mxu0 }
 0x1a4   : > { %618 = vxpose.xlu1.b32.cont [15/16] (narrow) %v515_v50, 8 }
 0x1a8   : > { %619 = vxpose.xlu1.b32.end [16/16] (narrow) %v869_v49, 8 }
 0x1aa   : > { %v872_v51 = vpop.f32.mrb[0].mxu1 }
 0x1ab   : > { %v525_v52 = vpop.f32.mrb[1].mxu1 }
 0x1ac   : > { %636 = vxpose.xlu0.b32.start [1/16] (narrow) %v525_v52, 8 }
 0x1b0   : > { %637 = vxpose.xlu0.b32.cont [2/16] (narrow) %v872_v51, 8 }
 0x1b2   : > { %v875_v53 = vpop.f32.mrb[2].mxu1 }
 0x1b3   : > { %v535_v54 = vpop.f32.mrb[3].mxu1 }
 0x1b4   : > { %638 = vxpose.xlu0.b32.cont [3/16] (narrow) %v535_v54, 8 }
 0x1b8   : > { %639 = vxpose.xlu0.b32.cont [4/16] (narrow) %v875_v53, 8 }
 0x1ba   : > { %v878_v55 = vpop.f32.mrb[4].mxu1 }
 0x1bb   : > { %v545_v56 = vpop.f32.mrb[5].mxu1 }
 0x1bc   : > { %640 = vxpose.xlu0.b32.cont [5/16] (narrow) %v545_v56, 8 }
 0x1c0   : > { %641 = vxpose.xlu0.b32.cont [6/16] (narrow) %v878_v55, 8 }
 0x1c2   : > { %v881_v57 = vpop.f32.mrb[6].mxu1 }
 0x1c3   : > { %v555_v58 = vpop.f32.mrb[7].mxu1 }
 0x1c4   : > { %642 = vxpose.xlu0.b32.cont [7/16] (narrow) %v555_v58, 8 }
 0x1c6   : > { %922 = vset.pattern.permute.xlu1 %v949_v60 }
 0x1c7   : > { %671 = vperm.xlu1 %922, %v668_v59  }
 0x1c8   : > { %643 = vxpose.xlu0.b32.cont [8/16] (narrow) %v881_v57, 8 }
 0x1ca   : > { %v884_v61 = vpop.f32.mrb[8].mxu1 }
 0x1cb   : > { %v565_v62 = vpop.f32.mrb[9].mxu1 }
 0x1cc   : > { %644 = vxpose.xlu0.b32.cont [9/16] (narrow) %v565_v62, 8 }
 0x1d0   : > { %645 = vxpose.xlu0.b32.cont [10/16] (narrow) %v884_v61, 8 }
 0x1d2   : > { %v887_v63 = vpop.f32.mrb[10].mxu1 }
 0x1d3   : > { %v575_v0 = vpop.f32.mrb[11].mxu1 }
 0x1d4   : > { %646 = vxpose.xlu0.b32.cont [11/16] (narrow) %v575_v0, 8 }
 0x1d8   : > { %647 = vxpose.xlu0.b32.cont [12/16] (narrow) %v887_v63, 8 }
 0x1da   : > { %v890_v1 = vpop.f32.mrb[12].mxu1 }
 0x1db   : > { %v585_v2 = vpop.f32.mrb[13].mxu1 }
 0x1dc   : > { %648 = vxpose.xlu0.b32.cont [13/16] (narrow) %v585_v2, 8 }
 0x1e0   : > { %649 = vxpose.xlu0.b32.cont [14/16] (narrow) %v890_v1, 8 }
 0x1e2   : > { %v893_v3 = vpop.f32.mrb[14].mxu1 }
 0x1e3   : > { %v595_v4 = vpop.f32.mrb[15].mxu1 }
 0x1e4   : > { %650 = vxpose.xlu0.b32.cont [15/16] (narrow) %v595_v4, 8 }
 0x1e8   : > { %651 = vxpose.xlu0.b32.end [16/16] (narrow) %v893_v3, 8 }
 0x1ec   : > { %v620_v5 = vpop.trf.xlu1 }
 0x211   : > { %923 = vset.pattern.permute.xlu0 %v949_v60 }
 0x22c   : > { %v652_v6 = vpop.trf.xlu0 }
 0x246   : > { %v672_v7 = vpop.permute.xlu1 %671 }
 0x247   : > { %v674_v8 = vadd.f32 %v672_v7, %v620_v5  ;;  %v675_v9 = vadd.f32 %v672_v7, %v652_v6 }
 0x249   : > { %676 = vst [vmem:[%s208_s27] sm:$0xff] %v674_v8  ;;  %677 = vst [vmem:[%s208_s27 + $0x8] sm:$0xff] %v675_v9 }
 0x24a PF: > { %s13_s14 = sadd.s32 1, %s947_s14   ;;  %s1053_s12 = smov %s943_s13 }
 0x24b   : > { %p10_p5 = scmp.ge.s32.totalorder %s13_s14, 4   ;;  %s1054_s13 = smov %s1056_s15 }
 0x24d   :  { %12 = sbr.rel (!%p10_p5) target bundleno = 2 (0x2), region = 62 }

</bundles_post_ra>
